<compile_context>
chip_gen: v6e
topology: v6e:2x2x1
jax: 0.10.0
libtpu: 0.0.40
codegen_flags: <defaults>
</compile_context>

<pallas_src>
import functools
import math

import jax
import jax.numpy as jnp
from jax import lax
from jax.experimental import pallas as pl
from jax.experimental.pallas import tpu as pltpu


def _pos_emb_kernel(inv_freq_ref, parity_ref, out_ref):
    ts, d = out_ref.shape
    row0 = pl.program_id(0) * ts
    rows = lax.broadcasted_iota(jnp.int32, (ts, d), 0) + row0
    angle = rows.astype(jnp.float32) * inv_freq_ref[...]          # (ts, d)
    s = jnp.sin(angle)
    c = jnp.cos(angle)                                             # exact cos for odd cols
    use_cos = jnp.broadcast_to(parity_ref[...], (ts, d)) > 0.5
    out_ref[...] = jnp.where(use_cos, c, s)


def _round_up(x: int, m: int) -> int:
    return ((x + m - 1) // m) * m


def _pick_tile_rows(max_len: int, d_model: int) -> int:
    """Largest multiple-of-8 row tile within a VMEM budget, >=2 grid steps."""
    if max_len <= 8:
        return max_len                       # tiny buffer: single full-extent block
    # Double-buffered output tile must stay well within the smallest scoped
    # VMEM default (16 MiB on v5e) and far under v7x's 64 MiB physical VMEM.
    budget_bytes = 12 * 1024 * 1024
    rows_budget = max(8, (budget_bytes // (2 * d_model * 4)) // 8 * 8)
    # Guarantee >= 2 grid steps so both v7x TensorCores get work.
    rows_half = _round_up((max_len + 1) // 2, 8)
    tile = min(rows_budget, rows_half)
    # For very long buffers aim for ~8 steps as long as tiles stay >= 512 rows.
    rows_eighth = _round_up((max_len + 7) // 8, 8)
    if rows_eighth >= 512:
        tile = min(tile, rows_eighth)
    return max(8, (tile // 8) * 8)


@functools.lru_cache(maxsize=None)
def _build_pe(max_len: int, d_model: int) -> jax.Array:
    """Builds the (1, max_len, d_model) positional-embedding buffer once."""
    assert d_model % 2 == 0, "d_model must be even (PyTorch code assumes this)"
    assert max_len < (1 << 24), "positions stored as f32; max_len must be < 2^24"

    tile_rows = _pick_tile_rows(max_len, d_model)
    grid = (pl.cdiv(max_len, tile_rows),)

    # Per-column constants, computed once in f32 (bitwise-matches the torch
    # buffer construction) and handed to the kernel as (1, D) inputs.
    half_coef = -(math.log(10000.0) / float(d_model))
    div_term = jnp.exp(jnp.arange(0, d_model, 2, dtype=jnp.float32) * half_coef)
    inv_freq = jnp.repeat(div_term, 2).reshape(1, d_model)          # (1, D)
    parity = (jnp.arange(d_model, dtype=jnp.int32) % 2).astype(jnp.float32)
    parity = parity.reshape(1, d_model)                             # (1, D)

    out_tile_bytes = 2 * tile_rows * d_model * 4                    # double-buffered
    vmem_limit = min(max(int(out_tile_bytes * 1.5) + (1 << 20), 4 << 20), 48 << 20)

    pe = pl.pallas_call(
        _pos_emb_kernel,
        out_shape=jax.ShapeDtypeStruct((max_len, d_model), jnp.float32),
        grid=grid,
        in_specs=[pl.BlockSpec((1, d_model), lambda i: (0, 0)),
                  pl.BlockSpec((1, d_model), lambda i: (0, 0))],
        out_specs=pl.BlockSpec((tile_rows, d_model), lambda i: (i, 0)),
        compiler_params=pltpu.CompilerParams(
            dimension_semantics=("parallel",),
            vmem_limit_bytes=vmem_limit),
    )(inv_freq, parity)
    # TODO(synk): for store-bound repeated builds with d_model < 128, a
    # lane-dense flattened (max_len*d_model/128, 128) output would avoid
    # masked stores; irrelevant here since pe is built once and cached.
    return jax.block_until_ready(pe[None, :, :])                    # (1, L, D)


class PositionalEmbedding:
    """Mirror of the PyTorch module: buffer built in __init__, forward slices."""

    def __init__(self, d_model: int, max_len: int = 3):
        self.pe = _build_pe(max_len, d_model)        # acts as register_buffer

    def __call__(self, x: jax.Array) -> jax.Array:
        return self.pe[:, : x.shape[1]]


def positional_embedding(x: jax.Array, max_len: int = 3) -> jax.Array:
    """Functional form of PositionalEmbedding.forward."""
    return _build_pe(max_len, x.shape[-1])[:, : x.shape[1]]


def _reference(seq_len: int, d_model: int) -> jnp.ndarray:
    # Pure-JAX reference identical to the PyTorch buffer construction.
    position = jnp.arange(seq_len, dtype=jnp.float32)[:, None]
    div_term = jnp.exp(
        jnp.arange(0, d_model, 2, dtype=jnp.float32)
        * -(math.log(10000.0) / d_model)
    )
    pe = jnp.zeros((seq_len, d_model), dtype=jnp.float32)
    pe = pe.at[:, 0::2].set(jnp.sin(position * div_term))
    pe = pe.at[:, 1::2].set(jnp.cos(position * div_term))
    return pe[None, :, :]


if __name__ == "__main__":
    key = jax.random.PRNGKey(0)

    # Small case matching the module defaults (max_len=3).
    batch, seq, d_model = 2, 3, 32
    x = jax.random.normal(key, (batch, seq, d_model), dtype=jnp.float32)

    mod = PositionalEmbedding(d_model, max_len=3)
    out = jax.block_until_ready(mod(x))
    ref = _reference(seq, d_model)
    assert out.shape == (1, seq, d_model), out.shape
    assert jnp.allclose(out, ref, atol=1e-5, rtol=1e-5), "mismatch vs reference"

    # Second call hits the cached buffer (no new pallas_call launch).
    out2 = jax.block_until_ready(mod(x))
    assert jnp.allclose(out2, ref, atol=1e-5, rtol=1e-5)

    # Awkward length (not a multiple of 8): exercises the cdiv grid with a
    # masked partial trailing block and >= 2 parallel grid steps.
    big_len, big_d = 1000, 128
    big = jax.block_until_ready(_build_pe(big_len, big_d))
    big_ref = _reference(big_len, big_d)
    assert big.shape == (1, big_len, big_d), big.shape
    assert jnp.allclose(big, big_ref, atol=1e-4, rtol=1e-5), "tiled path mismatch"

    print("KERNEL_OK")
</pallas_src>

<mosaic_0001>
module attributes {stable_mosaic.version = 11 : i64} {
  func.func @_pos_emb_kernel(%arg0: i32, %arg1: memref<1x32xf32, #tpu.memory_space<vmem>>, %arg2: memref<1x32xf32, #tpu.memory_space<vmem>>, %arg3: memref<3x32xf32, #tpu.memory_space<vmem>>) attributes {dimension_semantics = [#tpu.dimension_semantics<parallel>], iteration_bounds = array<i64: 1>, scalar_prefetch = 0 : i64, scratch_operands = 0 : i64, tpu.core_type = #tpu.core_type<tc>, window_params = [{pipeline_mode = #tpu.pipeline_mode<synchronous>, transform_indices = @transform_0, window_bounds = array<i64: 1, 32>}, {pipeline_mode = #tpu.pipeline_mode<synchronous>, transform_indices = @transform_1, window_bounds = array<i64: 1, 32>}, {transform_indices = @transform_2, window_bounds = array<i64: 3, 32>}]} {
    %c3_i32 = arith.constant 3 : i32
    %0 = arith.muli %arg0, %c3_i32 : i32
    %1 = tpu.iota {dimensions = array<i32: 0>} : vector<3x32xi32>
    %2 = vector.broadcast %0 : i32 to vector<3x32xi32>
    %3 = arith.addi %1, %2 : vector<3x32xi32>
    %4 = arith.sitofp %3 : vector<3x32xi32> to vector<3x32xf32>
    %c0 = arith.constant 0 : index
    %c0_0 = arith.constant 0 : index
    %5 = vector.load %arg1[%c0, %c0_0] : memref<1x32xf32, #tpu.memory_space<vmem>>, vector<1x32xf32>
    %6 = vector.broadcast %5 : vector<1x32xf32> to vector<3x32xf32>
    %7 = arith.mulf %4, %6 : vector<3x32xf32>
    %8 = math.sin %7 : vector<3x32xf32>
    %9 = math.cos %7 : vector<3x32xf32>
    %c0_1 = arith.constant 0 : index
    %c0_2 = arith.constant 0 : index
    %10 = vector.load %arg2[%c0_1, %c0_2] : memref<1x32xf32, #tpu.memory_space<vmem>>, vector<1x32xf32>
    %11 = vector.shape_cast %10 : vector<1x32xf32> to vector<1x32xf32>
    %12 = vector.broadcast %11 : vector<1x32xf32> to vector<3x32xf32>
    %cst = arith.constant 5.000000e-01 : f32
    %13 = vector.broadcast %cst : f32 to vector<3x32xf32>
    %14 = arith.cmpf ogt, %12, %13 : vector<3x32xf32>
    %15 = arith.select %14, %9, %8 : vector<3x32xi1>, vector<3x32xf32>
    %c0_3 = arith.constant 0 : index
    %c0_4 = arith.constant 0 : index
    %16 = vector.load %arg3[%c0_3, %c0_4] : memref<3x32xf32, #tpu.memory_space<vmem>>, vector<3x32xf32>
    tpu.vector_store %arg3[%c0_3, %c0_4], %15 {strides = array<i32>} : memref<3x32xf32, #tpu.memory_space<vmem>>, vector<3x32xf32>,
    return
  }
  func.func @transform_0(%arg0: i32) -> (i32, i32) {
    %c0_i32 = arith.constant 0 : i32
    %c0_i32_0 = arith.constant 0 : i32
    %c0_i32_1 = arith.constant 0 : i32
    return %c0_i32, %c0_i32_0 : i32, i32
  }
  func.func @transform_1(%arg0: i32) -> (i32, i32) {
    %c0_i32 = arith.constant 0 : i32
    %c0_i32_0 = arith.constant 0 : i32
    %c0_i32_1 = arith.constant 0 : i32
    return %c0_i32, %c0_i32_0 : i32, i32
  }
  func.func @transform_2(%arg0: i32) -> (i32, i32) {
    %c0_i32 = arith.constant 0 : i32
    %c0_i32_0 = arith.constant 0 : i32
    return %arg0, %c0_i32 : i32, i32
  }
}

</mosaic_0001>

<bundles_post_ra>
// kernel: tpu_custom_call.1
= control target key start
LH: loop header
LB: loop body
LE: loop exit
PB: predicated region body
PF: predicated region fallthrough
CT: control target
= control target key end

     0   :  { %7 = vsyncpa [#allocation3], 0  ;;  %s394_s0 = inlined_call_operand.hbm [shape: f32[1,32], index: 0, kind: input, shape index: {}]   ;;  %s395_s1 = inlined_call_operand.vmem [shape: f32[1,32], index: 1, kind: input, shape index: {}]   ;;  %s396_s2 = inlined_call_operand.hbm [shape: f32[3,32], index: 2, kind: output, shape index: {}]  }
   0x1   :  { %8 = vsyncpa [#allocation4], 0  ;;  %s341_s9 = smov [#allocation2]  }
   0x2   :  { %s15_s10 = sshll.u32 %s341_s9, 4  ;;  %s16_s10 = int_to_ptr.vmem [resolvable:$true] %s15_s10 }
   0x3   :  { %s305_s11 = scalar_lea.vmem %s16_s10, 16  ;;  %s309_s12 = scalar_lea.vmem %s16_s10, 32 }
   0x4   :  { %p306_p0 = scmp.ne.s32.totalorder %s16_s10, %s305_s11  ;;  %p310_p1 = scmp.lt.s32.totalorder %s16_s10, %s16_s10 }
   0x5   :  { %p311_p2 = scmp.lt.s32.totalorder %s309_s12, %s305_s11 }
   0x7   :  { %p312_p3 = por %p311_p2, %p310_p1 }
   0x9   :  { %p313_p4 = pnand %p312_p3, %p306_p0 }
   0xb   :  { %316 = shalt.err (!%p313_p4)
}
   0xc   :  { %18 = dma.hbm_to_vmem [thread:$0]  %s394_s0, 16, %s16_s10, [#allocation3]  }
   0xd   :  { %337 = dma.done.wait [#allocation3], 16  }
   0xe   :  { %338 = vsyncadd [#allocation3], 4294967280  ;;  %v25_v0 = vlaneseq  ;;  %v271_v3 = vld [vmem:[#allocation2] ss:$0 sm:$0xff]  ;;  %v342_v16 = vmov 683565275  }
   0xf   :  { %v343_v18 = vmov 2475754826   ;;  %v344_v20 = vmov 2131351028   ;;  %v345_v22 = vmov 2102212464  }
  0x10   :  { %v26_v1 = vshrl.u32 %v25_v0, 7  ;;  %v346_v24 = vmov 920167782   ;;  %v347_v31 = vmov 1326507024   ;;  %s348_s16 = smov [#allocation5]  }
  0x11   :  { %s262_s17 = sshll.u32 %s348_s16, 4  ;;  %s263_s17 = int_to_ptr.vmem [resolvable:$true] %s262_s17 }
  0x12   :  { %v29_v2 = vcvt.s32.f32 %v26_v1  ;;  %p322_p6 = scmp.lt.s32.totalorder %s263_s17, %s263_s17 }
  0x14   :  { %v367_v4 = vmul.f32 %v271_v3, %v29_v2 }
  0x16   :  { %v41_v5 = vand.u32 2139095040, %v367_v4  ;;  %v38_v7 = vand.u32 2147483647, %v367_v4  ;;  %vm40_vm7 = vcmp.lt.s32.totalorder %v367_v4, 0  ;;  %vm130_vm15 = vweird.f32 %v367_v4 }
  0x18   :  { %v42_v6 = vshrl.u32 %v41_v5, 23  ;;  %v45_v10 = vand.u32 8388607, %v38_v7  ;;  %vm39_vm8 = vcmp.le.f32.partialorder %v38_v7, 0.7853982 }
  0x19   :  { %v280_v7 = vld [vmem:[%s395_s1] ss:$0 sm:$0xff]  ;;  %s317_s1 = scalar_lea.vmem %s263_s17, 64 }
  0x1a   :  { %v272_v8 = vadd.s32 4294967169, %v42_v6  ;;  %v46_v13 = vor.u32 8388608, %v45_v10  ;;  %p318_p5 = scmp.ne.s32.totalorder %s263_s17, %s317_s1  ;;  %p323_p7 = scmp.lt.s32.totalorder %s317_s1, %s317_s1 }
  0x1c   :  { %v48_v9 = vadd.s32 1, %v272_v8  ;;  %v86_v33 = vshll.u32 %v46_v13, 8  ;;  %p324_p8 = por %p323_p7, %p322_p6 }
  0x1e   :  { %vm49_vm0 = vcmp.gt.s32.totalorder %v48_v9, 0  ;;  %p325_p9 = pnand %p324_p8, %p318_p5 }
  0x1f   :  { %v50_v11 = vsel %vm49_vm0, %v48_v9, 0  ;;  %vm252_vm0 = vcmp.gt.f32.partialorder %v280_v7, 0.5 }
  0x20   :  { %v52_v12 = vand.u32 31, %v50_v11  ;;  %v51_v14 = vshrl.u32 %v50_v11, 5 }
  0x22   :  { %v53_v15 = vsub.s32 32, %v52_v12  ;;  %v55_v17 = vshll.u32 %v342_v16, %v52_v12  ;;  %v58_v19 = vshll.u32 %v343_v18, %v52_v12  ;;  %v61_v21 = vshll.u32 %v344_v20, %v52_v12 }
  0x23   :  { %v64_v23 = vshll.u32 %v345_v22, %v52_v12  ;;  %v67_v25 = vshll.u32 %v346_v24, %v52_v12  ;;  %vm70_vm1 = vcmp.lt.s32.totalorder %v51_v14, 1  ;;  %vm73_vm2 = vcmp.lt.s32.totalorder %v51_v14, 4 }
  0x24   :  { %v54_v26 = vshrl.u32 %v342_v16, %v53_v15  ;;  %v56_v27 = vshrl.u32 %v343_v18, %v53_v15  ;;  %v59_v28 = vshrl.u32 %v344_v20, %v53_v15  ;;  %v62_v29 = vshrl.u32 %v345_v22, %v53_v15 }
  0x25   :  { %v65_v30 = vshrl.u32 %v346_v24, %v53_v15  ;;  %v68_v32 = vshrl.u32 %v347_v31, %v53_v15  ;;  %vm71_vm3 = vcmp.lt.s32.totalorder %v51_v14, 2  ;;  %vm72_vm4 = vcmp.lt.s32.totalorder %v51_v14, 3 }
  0x26   :  { %v57_v34 = vor.u32 %v56_v27, %v55_v17  ;;  %v60_v35 = vor.u32 %v59_v28, %v58_v19  ;;  %v63_v36 = vor.u32 %v62_v29, %v61_v21 }
  0x27   :  { %v66_v37 = vor.u32 %v65_v30, %v64_v23  ;;  %v69_v38 = vor.u32 %v68_v32, %v67_v25 }
  0x28   :  { %v74_v39 = vsel %vm70_vm1, %v54_v26, %v57_v34  ;;  %v75_v40 = vsel %vm73_vm2, %v63_v36, 2102212464  ;;  %v78_v41 = vsel %vm70_vm1, %v57_v34, %v60_v35  ;;  %v82_v42 = vsel %vm70_vm1, %v60_v35, %v63_v36 }
  0x29   :  { %v76_v43 = vsel %vm72_vm4, %v60_v35, %v75_v40  ;;  %v79_v44 = vsel %vm73_vm2, %v66_v37, 920167782  ;;  %v83_v45 = vsel %vm73_vm2, %v69_v38, 1326507024  ;;  %vm254_vm1 = vcmask 256000  }
  0x2a   :  { %v80_v46 = vsel %vm72_vm4, %v63_v36, %v79_v44  ;;  %v84_v47 = vsel %vm72_vm4, %v66_v37, %v83_v45  ;;  %v77_v48 = vsel %vm71_vm3, %v74_v39, %v76_v43 }
  0x2b   :  { %v81_v49 = vsel %vm71_vm3, %v78_v41, %v80_v46  ;;  %v85_v50 = vsel %vm71_vm3, %v82_v42, %v84_v47  ;;  %v93_v55 = vmul.u32 %v86_v33, %v77_v48 }
  0x2c   :  { %v373_v51 = vmul.u32.u64.low %v86_v33, %v85_v50  ;;  %v374_v52 = vmul.u32.u64.high %v86_v33, %v85_v50, %v373_v51  ;;  %v376_v53 = vmul.u32.u64.low %v86_v33, %v81_v49  ;;  %v377_v54 = vmul.u32.u64.high %v86_v33, %v81_v49, %v376_v53 }
  0x2e   :  { %vm95_vm5 = vc.u32 %v374_v52, %v376_v53  ;;  %v96_v56 = vadd.s32 1, %v377_v54  ;;  %v94_v3 = vadd.s32 %v376_v53, %v374_v52 }
  0x30   :  { %v97_v57 = vsel %vm95_vm5, %v96_v56, %v377_v54 }
  0x31   :  { %v98_v58 = vadd.s32 %v97_v57, %v93_v55 }
  0x33   :  { %v99_v59 = vadd.s32 536870912, %v98_v58 }
  0x35   :  { %v100_v60 = vshrl.u32 %v99_v59, 30 }
  0x37   :  { %v101_v61 = vshll.u32 %v100_v60, 30  ;;  %v124_v18 = vsub.s32 4, %v100_v60 }
  0x39   :  { %v102_v62 = vsub.s32 %v98_v58, %v101_v61  ;;  %v125_v21 = vsel %vm40_vm7, %v124_v18, %v100_v60 }
  0x3a   :  { %v127_v23 = vsel %vm39_vm8, 0, %v125_v21 }
  0x3b   :  { %v104_v63 = vsub.s32 0, %v102_v62  ;;  %v131_v24 = vadd.s32 3, %v127_v23  ;;  %v235_v26 = vand.u32 3, %v127_v23 }
  0x3d   :  { %v273_v0 = vmin.u32 %v104_v63, %v102_v62  ;;  %v132_v25 = vand.u32 3, %v131_v24  ;;  %vm240_vm10 = vcmp.eq.s32.totalorder %v235_v26, 2  ;;  %vm237_vm12 = vcmp.eq.s32.totalorder %v235_v26, 0 }
  0x3e   :  { %vm236_vm14 = vcmp.lt.s32.totalorder %v235_v26, 2 }
  0x3f   :  { %v106_v1 = vclz %v273_v0  ;;  %vm137_vm9 = vcmp.eq.s32.totalorder %v132_v25, 2  ;;  %vm134_vm11 = vcmp.eq.s32.totalorder %v132_v25, 0  ;;  %vm133_vm13 = vcmp.lt.s32.totalorder %v132_v25, 2 }
  0x41   :  { %v274_v2 = vadd.s32 4294967294, %v106_v1 }
  0x43   :  { %vm275_vm6 = vcmp.lt.s32.totalorder %v274_v2, 0 }
  0x44   :  { %v109_v5 = vsel %vm275_vm6, 0, %v274_v2 }
  0x45   :  { %v110_v6 = vsub.s32 32, %v109_v5  ;;  %v111_v8 = vshll.u32 %v102_v62, %v109_v5  ;;  %v114_v9 = vsub.s32 4294967266, %v109_v5 }
  0x47   :  { %v112_v10 = vshrl.u32 %v94_v3, %v110_v6  ;;  %v115_v11 = vadd.s32 127, %v114_v9 }
  0x49   :  { %v113_v12 = vor.u32 %v112_v10, %v111_v8  ;;  %v116_v13 = vshll.u32 %v115_v11, 23 }
  0x4b   :  { %v117_v14 = vor.u32 4788187, %v116_v13  ;;  %v120_v15 = vcvt.s32.f32 %v113_v12 }
  0x4d   :  { %v118_v16 = vand.u32 2147483647, %v117_v14 }
  0x4f   :  { %v121_v17 = vmul.f32 %v120_v15, %v118_v16 }
  0x51   :  { %v122_v19 = vxor.u32 2147483648, %v121_v17 }
  0x53   :  { %v123_v20 = vsel %vm40_vm7, %v122_v19, %v121_v17 }
  0x54   :  { %v126_v22 = vsel %vm39_vm8, %v367_v4, %v123_v20 }
  0x55   :  { %293 = vcosq.f32 %v126_v22 }
  0x56   :  { %295 = vsinq.f32 %v126_v22 }
  0x62   :  { %v294_v27 = vpop.eup %293 }
  0x63   :  { %v296_v28 = vpop.eup %295  ;;  %v138_v29 = vxor.u32 2147483648, %v294_v27 }
  0x64   :  { %v135_v30 = vxor.u32 2147483648, %v296_v28 }
  0x65   :  { %v139_v31 = vsel %vm137_vm9, %v138_v29, %v296_v28  ;;  %v242_v32 = vsel %vm240_vm10, %v138_v29, %v296_v28 }
  0x66   :  { %v136_v33 = vsel %vm134_vm11, %v294_v27, %v135_v30  ;;  %v239_v34 = vsel %vm237_vm12, %v294_v27, %v135_v30 }
  0x67   :  { %v140_v35 = vsel %vm133_vm13, %v136_v33, %v139_v31  ;;  %v243_v36 = vsel %vm236_vm14, %v239_v34, %v242_v32 }
  0x68   :  { %v141_v37 = vsel %vm130_vm15, nan, %v140_v35  ;;  %v244_v38 = vsel %vm130_vm15, nan, %v243_v36 }
  0x69   :  { %v253_v39 = vsel %vm252_vm0, %v244_v38, %v141_v37 }
  0x6a   :  { %255 = vst.msk [vmem:[#allocation5] sm:$0x7] %vm254_vm1, %v253_v39 }
  0x6b   :  { %328 = shalt.err (!%p325_p9)
}
  0x6c   :  { %265 = dma.vmem_to_hbm [thread:$0]  %s263_s17, 64, %s396_s2, [#allocation4]  }
  0x6d   :  { %339 = dma.done.wait [#allocation4], 64  }
  0x6e   :  { %340 = vsyncadd [#allocation4], 4294967232 }
  0x6f   :  { %269 = vsyncpa [#allocation3], 1 }
  0x70   :  { %270 = vsyncpa [#allocation4], 1 }

</bundles_post_ra>
